<compile_context>
chip_gen: v7x
topology: tpu7x:2x2x1
jax: 0.10.0
libtpu: 0.0.40
codegen_flags: <defaults>
</compile_context>

<pallas_src>
import jax
import jax.numpy as jnp
from jax.experimental import pallas as pl
from jax.experimental.pallas import tpu as pltpu

NEG_INF = -1e9
LEAKY_SLOPE = 0.2       # PyG GATConv default negative_slope
DROPOUT_P = 0.5         # F.dropout default p (F.dropout defaults to training=True)
LANE = 128              # TPU lane width


def _round_up(v, m):
    return (v + m - 1) // m * m


def _vmem_limit_bytes():
    """Generation-aware scoped-VMEM budget."""
    kind = ""
    if jax.default_backend() == "tpu":
        kind = jax.devices()[0].device_kind.lower()
    if "v5" in kind or "v6" in kind:
        return 100 * 1024 * 1024        # 128 MiB physical on v5e / v6e
    if "v7" in kind:
        return 48 * 1024 * 1024         # 64 MiB physical on v7x
    return 32 * 1024 * 1024             # unknown / older generations: stock limit


def _compiler_params(dims):
    return pltpu.CompilerParams(
        dimension_semantics=dims,
        vmem_limit_bytes=_vmem_limit_bytes(),
    )


def _block_spec(shape, index_map, buffers=None):
    # Multi-buffering is an optional hint; fall back cleanly if unsupported.
    if buffers is not None and hasattr(pl, "Buffered"):
        try:
            return pl.BlockSpec(shape, index_map, pipeline_mode=pl.Buffered(buffers))
        except TypeError:
            pass
    return pl.BlockSpec(shape, index_map)


def _divisor_tiles(n_pad, cap):
    """Multiples of LANE that divide n_pad and are <= cap, descending."""
    q = n_pad // LANE
    return [LANE * d for d in range(q, 0, -1) if q % d == 0 and LANE * d <= cap]


def _choose_tiles(n_pad, vmem_bytes):
    """VMEM-aware (dst_tile, src_tile) selection."""
    budget = int(vmem_bytes * 0.6)

    def step_bytes(t, st):
        mask = 3 * t * st                      # int8 mask blocks, triple buffered
        h = 3 * st * LANE * 2                  # bf16 streamed source features
        resident = t * LANE * (2 + 2 + 4 + 4)  # s slab + drop (bf16), out + acc (f32)
        return mask + h + resident

    row_tiles = _divisor_tiles(n_pad, 512)
    if n_pad >= 2 * LANE:                      # >= 2 row tiles keeps both v7x TCs busy
        row_tiles = [t for t in row_tiles if n_pad // t >= 2] or [LANE]
    tile = row_tiles[0]
    for st in _divisor_tiles(n_pad, 4096):
        if step_bytes(tile, st) <= budget:
            return tile, st
    for t in row_tiles:                        # fall back: shrink the row tile too
        if step_bytes(t, LANE) <= budget:
            return t, LANE
    return LANE, LANE


# ---------------------------------------------------------------------------
# Kernel 1: feature projection + fused attention projections.
#   h = x @ W            (bf16 in, f32 acc, bf16 out)
#   s = h @ A            (A[:, 0] = att_dst, A[:, 1] = att_src; bf16 out)
# ---------------------------------------------------------------------------
def _project_kernel(x_ref, w_ref, aproj_ref, h_ref, s_ref):
    h = jnp.dot(x_ref[...], w_ref[...], preferred_element_type=jnp.float32)
    h_bf = h.astype(jnp.bfloat16)
    h_ref[...] = h_bf
    s = jnp.dot(h_bf, aproj_ref[...], preferred_element_type=jnp.float32)
    s_ref[...] = s.astype(jnp.bfloat16)


def _project(x, w, aproj, tile):
    n_pad, d_in = x.shape
    f_out = w.shape[1]
    return pl.pallas_call(
        _project_kernel,
        grid=(n_pad // tile,),
        in_specs=[
            pl.BlockSpec((tile, d_in), lambda i: (i, 0)),
            pl.BlockSpec((d_in, f_out), lambda i: (0, 0)),   # weights resident
            pl.BlockSpec((f_out, LANE), lambda i: (0, 0)),   # fused attn projection
        ],
        out_specs=(
            pl.BlockSpec((tile, f_out), lambda i: (i, 0)),
            pl.BlockSpec((tile, LANE), lambda i: (i, 0)),
        ),
        out_shape=(
            jax.ShapeDtypeStruct((n_pad, f_out), jnp.bfloat16),
            jax.ShapeDtypeStruct((n_pad, LANE), jnp.bfloat16),
        ),
        compiler_params=_compiler_params(("parallel",)),
    )(x, w, aproj)


# ---------------------------------------------------------------------------
# Kernel 2: masked attention + aggregation with online softmax over src tiles.
# ---------------------------------------------------------------------------
def _init_state(m_ref, l_ref, acc_ref):
    m_ref[...] = jnp.full(m_ref.shape, -jnp.inf, jnp.float32)
    l_ref[...] = jnp.zeros(l_ref.shape, jnp.float32)
    acc_ref[...] = jnp.zeros(acc_ref.shape, jnp.float32)


def _online_softmax_step(h_ref, s_ref, ssrc_ref, mask_ref, m_ref, l_ref, acc_ref):
    sdst = s_ref[:, 0:1].astype(jnp.float32)          # [T, 1] destination scores
    ssrc = ssrc_ref[...].astype(jnp.float32)          # [1, S] source scores
    e = sdst + ssrc                                   # [T, S] raw edge scores
    e = jnp.where(e > 0.0, e, LEAKY_SLOPE * e)        # LeakyReLU(0.2)
    keep = mask_ref[...].astype(jnp.float32)          # int8 adjacency block
    e = jnp.where(keep > 0.0, e, NEG_INF)             # non-edges -> NEG_INF
    m_prev = m_ref[...]
    m_new = jnp.maximum(m_prev, jnp.max(e, axis=-1, keepdims=True))
    alpha = jnp.exp(m_prev - m_new)                   # rescale of previous partials
    p = jnp.exp(e - m_new)                            # masked entries underflow to 0
    l_ref[...] = alpha * l_ref[...] + jnp.sum(p, axis=-1, keepdims=True)
    acc_ref[...] = alpha * acc_ref[...] + jnp.dot(
        p.astype(jnp.bfloat16), h_ref[...], preferred_element_type=jnp.float32)
    m_ref[...] = m_new


def _gat_layer1_kernel(h_ref, s_ref, ssrc_ref, mask_ref, bias_ref, drop_ref,
                       out_ref, m_ref, l_ref, acc_ref):
    j = pl.program_id(1)

    @pl.when(j == 0)
    def _():
        _init_state(m_ref, l_ref, acc_ref)

    _online_softmax_step(h_ref, s_ref, ssrc_ref, mask_ref, m_ref, l_ref, acc_ref)

    @pl.when(j == pl.num_programs(1) - 1)
    def _():
        out = acc_ref[...] / l_ref[...] + bias_ref[...]
        out = jnp.maximum(out, 0.0)                        # ReLU
        out = out * drop_ref[...].astype(jnp.float32)      # dropout (keep/(1-p) mask)
        out_ref[...] = out.astype(out_ref.dtype)


def _gat_layer2_kernel(h_ref, s_ref, ssrc_ref, mask_ref, bias_ref,
                       out_ref, m_ref, l_ref, acc_ref):
    j = pl.program_id(1)

    @pl.when(j == 0)
    def _():
        _init_state(m_ref, l_ref, acc_ref)

    _online_softmax_step(h_ref, s_ref, ssrc_ref, mask_ref, m_ref, l_ref, acc_ref)

    @pl.when(j == pl.num_programs(1) - 1)
    def _():
        # bias carries NEG_INF on padded class lanes -> they vanish in log_softmax
        z = acc_ref[...] / l_ref[...] + bias_ref[...]
        m = jnp.max(z, axis=-1, keepdims=True)
        lse = m + jnp.log(jnp.sum(jnp.exp(z - m), axis=-1, keepdims=True))
        out_ref[...] = (z - lse).astype(out_ref.dtype)


def _attention(kernel, h_all, s, ssrc_row, mask, bias, tile, src_tile,
               extra=(), out_dtype=jnp.float32):
    n_pad, f_out = h_all.shape
    in_specs = [
        pl.BlockSpec((src_tile, f_out), lambda i, j: (j, 0)),           # streamed h
        pl.BlockSpec((tile, LANE), lambda i, j: (i, 0)),                # lane-dense s slab
        pl.BlockSpec((1, src_tile), lambda i, j: (0, j)),               # src scores row
        _block_spec((tile, src_tile), lambda i, j: (i, j), buffers=3),  # int8 mask
        pl.BlockSpec((1, f_out), lambda i, j: (0, 0)),                  # bias resident
    ]
    args = [h_all, s, ssrc_row, mask, bias]
    for arr in extra:
        in_specs.append(pl.BlockSpec((tile, arr.shape[1]), lambda i, j: (i, 0)))
        args.append(arr)
    return pl.pallas_call(
        kernel,
        grid=(n_pad // tile, n_pad // src_tile),
        in_specs=in_specs,
        out_specs=pl.BlockSpec((tile, f_out), lambda i, j: (i, 0)),
        out_shape=jax.ShapeDtypeStruct((n_pad, f_out), out_dtype),
        scratch_shapes=[
            pltpu.VMEM((tile, 1), jnp.float32),        # running max m
            pltpu.VMEM((tile, 1), jnp.float32),        # running denom l
            pltpu.VMEM((tile, f_out), jnp.float32),    # running weighted sum
        ],
        compiler_params=_compiler_params(("parallel", "arbitrary")),
    )(*args)


# ---------------------------------------------------------------------------
# Full forward pass.
# ---------------------------------------------------------------------------
def gat_forward(x, edge_index, params, dropout_key, training=True):
    n, d = x.shape
    ncls = params["w2"].shape[1]

    n_pad = _round_up(n, LANE)
    d_pad = _round_up(d, LANE)
    f_pad = LANE                                  # hidden / class dims -> 128 lanes

    tile, src_tile = _choose_tiles(n_pad, _vmem_limit_bytes())

    # dense int8 adjacency (adj[dst, src] = 1), self loops on every row incl. padding
    # TODO(synk): for genuinely sparse graphs switch to CSR neighbor lists +
    #             PrefetchScalarGridSpec so cost scales with E instead of N^2.
    idx = jnp.arange(n_pad)
    adj = jnp.zeros((n_pad, n_pad), jnp.int8)
    adj = adj.at[edge_index[1], edge_index[0]].set(1)
    adj = adj.at[idx, idx].set(1)

    def pad2(a, rows, cols, dtype):
        out = jnp.zeros((rows, cols), dtype)
        return out.at[: a.shape[0], : a.shape[1]].set(a.astype(dtype))

    x_p = pad2(x, n_pad, d_pad, jnp.bfloat16)
    w1 = pad2(params["w1"], d_pad, f_pad, jnp.bfloat16)
    w2 = pad2(params["w2"], f_pad, f_pad, jnp.bfloat16)
    b1 = pad2(params["bias1"], 1, f_pad, jnp.float32)
    # bias2 carries NEG_INF on padded class lanes so log_softmax ignores them
    b2 = jnp.full((1, f_pad), NEG_INF, jnp.float32)
    b2 = b2.at[0, :ncls].set(params["bias2"][0].astype(jnp.float32))

    def attn_proj(att_dst, att_src):
        a = jnp.zeros((f_pad, LANE), jnp.bfloat16)
        a = a.at[: att_dst.shape[1], 0].set(att_dst[0].astype(jnp.bfloat16))
        a = a.at[: att_src.shape[1], 1].set(att_src[0].astype(jnp.bfloat16))
        return a

    a1 = attn_proj(params["att_dst1"], params["att_src1"])
    a2 = attn_proj(params["att_dst2"], params["att_src2"])

    # dropout keep-mask with the 1/(1-p) scale folded in (F.dropout defaults to
    # training=True, matching the torch forward).
    # TODO(synk): dropout mask comes from JAX's RNG, not torch's RNG stream.
    if training:
        keep = jax.random.bernoulli(dropout_key, 1.0 - DROPOUT_P, (n_pad, f_pad))
        drop = (keep.astype(jnp.float32) / (1.0 - DROPOUT_P)).astype(jnp.bfloat16)
    else:
        drop = jnp.ones((n_pad, f_pad), jnp.bfloat16)

    # layer 1: project -> masked attention + bias + ReLU + dropout
    h1p, s1 = _project(x_p, w1, a1, tile)
    ssrc1 = s1[:, 1].reshape(1, n_pad)
    h1 = _attention(_gat_layer1_kernel, h1p, s1, ssrc1, adj, b1, tile, src_tile,
                    extra=(drop,), out_dtype=jnp.bfloat16)

    # layer 2: project -> masked attention + bias + log_softmax
    h2p, s2 = _project(h1, w2, a2, tile)
    ssrc2 = s2[:, 1].reshape(1, n_pad)
    z = _attention(_gat_layer2_kernel, h2p, s2, ssrc2, adj, b2, tile, src_tile,
                   out_dtype=jnp.float32)

    return z[:n, :ncls]


if __name__ == "__main__":
    N, DIM, HID, NCLS, E = 32, 16, 16, 8, 64

    key = jax.random.PRNGKey(0)
    k = jax.random.split(key, 10)

    # deterministic example inputs
    x = jax.random.normal(k[0], (N, DIM), jnp.float32)
    src = jax.random.randint(k[1], (E,), 0, N)
    dst = jax.random.randint(k[2], (E,), 0, N)
    edge_index = jnp.stack([src, dst], axis=0)       # [2, E]: row0 = src, row1 = dst

    # deterministic parameter init (GATConv(dim,16) / GATConv(16,n_classes), heads=1)
    params = dict(
        w1=jax.random.normal(k[3], (DIM, HID), jnp.float32) * 0.1,
        att_src1=jax.random.normal(k[4], (1, HID), jnp.float32) * 0.1,
        att_dst1=jax.random.normal(k[5], (1, HID), jnp.float32) * 0.1,
        bias1=jnp.zeros((1, HID), jnp.float32),
        w2=jax.random.normal(k[6], (HID, NCLS), jnp.float32) * 0.1,
        att_src2=jax.random.normal(k[7], (1, NCLS), jnp.float32) * 0.1,
        att_dst2=jax.random.normal(k[8], (1, NCLS), jnp.float32) * 0.1,
        bias2=jnp.zeros((1, NCLS), jnp.float32),
    )

    out = gat_forward(x, edge_index, params, dropout_key=k[9])
    out = jax.block_until_ready(out)

    assert out.shape == (N, NCLS)
    assert bool(jnp.all(jnp.isfinite(out)))
    print("KERNEL_OK")
</pallas_src>

<mosaic_0001>
module attributes {stable_mosaic.version = 11 : i64} {
  func.func @_project_kernel(%arg0: i32, %arg1: memref<128x128xbf16, #tpu.memory_space<vmem>>, %arg2: memref<128x128xbf16, #tpu.memory_space<vmem>>, %arg3: memref<128x128xbf16, #tpu.memory_space<vmem>>, %arg4: memref<128x128xbf16, #tpu.memory_space<vmem>>, %arg5: memref<128x128xbf16, #tpu.memory_space<vmem>>) attributes {dimension_semantics = [#tpu.dimension_semantics<parallel>], iteration_bounds = array<i64: 1>, scalar_prefetch = 0 : i64, scratch_operands = 0 : i64, tpu.core_type = #tpu.core_type<tc>, window_params = [{transform_indices = @transform_0, window_bounds = array<i64: 128, 128>}, {pipeline_mode = #tpu.pipeline_mode<synchronous>, transform_indices = @transform_1, window_bounds = array<i64: 128, 128>}, {pipeline_mode = #tpu.pipeline_mode<synchronous>, transform_indices = @transform_2, window_bounds = array<i64: 128, 128>}, {transform_indices = @transform_3, window_bounds = array<i64: 128, 128>}, {transform_indices = @transform_4, window_bounds = array<i64: 128, 128>}]} {
    %c0 = arith.constant 0 : index
    %c0_0 = arith.constant 0 : index
    %0 = vector.load %arg1[%c0, %c0_0] : memref<128x128xbf16, #tpu.memory_space<vmem>>, vector<128x128xbf16>
    %c0_1 = arith.constant 0 : index
    %c0_2 = arith.constant 0 : index
    %1 = vector.load %arg2[%c0_1, %c0_2] : memref<128x128xbf16, #tpu.memory_space<vmem>>, vector<128x128xbf16>
    %cst = arith.constant dense<0.000000e+00> : vector<128x128xf32>
    %2 = tpu.matmul %0, %1, %cst {dimension_numbers = #tpu.dot_dimension_numbers<[1], [0], [0], [1], [0, 0, 1, 1], [], []>} : vector<128x128xbf16>, vector<128x128xbf16>, vector<128x128xf32> -> vector<128x128xf32>
    %3 = arith.truncf %2 : vector<128x128xf32> to vector<128x128xbf16>
    %c0_3 = arith.constant 0 : index
    %c0_4 = arith.constant 0 : index
    %4 = vector.load %arg4[%c0_3, %c0_4] : memref<128x128xbf16, #tpu.memory_space<vmem>>, vector<128x128xbf16>
    tpu.vector_store %arg4[%c0_3, %c0_4], %3 {strides = array<i32>} : memref<128x128xbf16, #tpu.memory_space<vmem>>, vector<128x128xbf16>,
    %c0_5 = arith.constant 0 : index
    %c0_6 = arith.constant 0 : index
    %5 = vector.load %arg3[%c0_5, %c0_6] : memref<128x128xbf16, #tpu.memory_space<vmem>>, vector<128x128xbf16>
    %cst_7 = arith.constant dense<0.000000e+00> : vector<128x128xf32>
    %6 = tpu.matmul %3, %5, %cst_7 {dimension_numbers = #tpu.dot_dimension_numbers<[1], [0], [0], [1], [0, 0, 1, 1], [], []>} : vector<128x128xbf16>, vector<128x128xbf16>, vector<128x128xf32> -> vector<128x128xf32>
    %7 = arith.truncf %6 : vector<128x128xf32> to vector<128x128xbf16>
    %c0_8 = arith.constant 0 : index
    %c0_9 = arith.constant 0 : index
    %8 = vector.load %arg5[%c0_8, %c0_9] : memref<128x128xbf16, #tpu.memory_space<vmem>>, vector<128x128xbf16>
    tpu.vector_store %arg5[%c0_8, %c0_9], %7 {strides = array<i32>} : memref<128x128xbf16, #tpu.memory_space<vmem>>, vector<128x128xbf16>,
    return
  }
  func.func @transform_0(%arg0: i32) -> (i32, i32) {
    %c0_i32 = arith.constant 0 : i32
    %c0_i32_0 = arith.constant 0 : i32
    return %arg0, %c0_i32 : i32, i32
  }
  func.func @transform_1(%arg0: i32) -> (i32, i32) {
    %c0_i32 = arith.constant 0 : i32
    %c0_i32_0 = arith.constant 0 : i32
    %c0_i32_1 = arith.constant 0 : i32
    return %c0_i32, %c0_i32_0 : i32, i32
  }
  func.func @transform_2(%arg0: i32) -> (i32, i32) {
    %c0_i32 = arith.constant 0 : i32
    %c0_i32_0 = arith.constant 0 : i32
    %c0_i32_1 = arith.constant 0 : i32
    return %c0_i32, %c0_i32_0 : i32, i32
  }
  func.func @transform_3(%arg0: i32) -> (i32, i32) {
    %c0_i32 = arith.constant 0 : i32
    %c0_i32_0 = arith.constant 0 : i32
    return %arg0, %c0_i32 : i32, i32
  }
  func.func @transform_4(%arg0: i32) -> (i32, i32) {
    %c0_i32 = arith.constant 0 : i32
    %c0_i32_0 = arith.constant 0 : i32
    return %arg0, %c0_i32 : i32, i32
  }
}

</mosaic_0001>

<bundles_post_ra>
// kernel: tpu_custom_call.1
= control target key start
LH: loop header
LB: loop body
LE: loop exit
PB: predicated region body
PF: predicated region fallthrough
CT: control target
= control target key end

     0   :  { %10 = vsyncpa [#allocation3], 0  ;;  %s1181_s0 = inlined_call_operand.hbm [shape: bf16[128,128], index: 0, kind: input, shape index: {}]   ;;  %s1182_s1 = inlined_call_operand.hbm [shape: bf16[128,128], index: 1, kind: input, shape index: {}]   ;;  %s1183_s2 = inlined_call_operand.hbm [shape: bf16[128,128], index: 2, kind: input, shape index: {}]   ;;  %s1184_s3 = inlined_call_operand.hbm [shape: bf16[128,128], index: 3, kind: output, shape index: {0}]   ;;  %s1185_s4 = inlined_call_operand.hbm [shape: bf16[128,128], index: 4, kind: output, shape index: {1}]  }
   0x1   :  { %11 = vsyncpa [#allocation6], 0 }
   0x2   :  { %12 = vsyncpa [#allocation4], 0 }
   0x3   :  { %13 = vsyncpa [#allocation10], 0  ;;  %s1067_s15 = smov [#allocation5]   ;;  %s1068_s17 = smov [#allocation2]  }
   0x4   :  { %s31_s16 = sshll.u32 %s1067_s15, 4  ;;  %s19_s18 = sshll.u32 %s1068_s17, 4  ;;  %s32_s16 = int_to_ptr.vmem [resolvable:$true] %s31_s16  ;;  %s1099_s18 = int_to_ptr.vmem [resolvable:$true] %s19_s18 }
   0x5   :  { %s949_s21 = scalar_lea.hbm %s1182_s1, 1024 }
   0x6   :  { %p950_p0 = scmp.ne.s32.totalorder %s1182_s1, %s949_s21  ;;  %p953_p1 = scmp.lt.u32.totalorder %s949_s21, %s1182_s1 }
   0x8   :  { %p955_p2 = pnand %p953_p1, %p950_p0 }
   0xa   :  { %958 = shalt.err (!%p955_p2)
}
   0xb   :  { %s959_s26 = scalar_lea.vmem %s32_s16, 1024  ;;  %p964_p4 = scmp.lt.s32.totalorder %s32_s16, %s32_s16 }
   0xc   :  { %p960_p3 = scmp.ne.s32.totalorder %s32_s16, %s959_s26  ;;  %p965_p5 = scmp.lt.s32.totalorder %s959_s26, %s959_s26 }
   0xe   :  { %p966_p6 = por %p965_p5, %p964_p4 }
  0x10   :  { %p967_p7 = pnand %p966_p6, %p960_p3 }
  0x12   :  { %970 = shalt.err (!%p967_p7)
}
  0x13   :  { %s1069_s27 = smov 64   ;;  %s1070_s28 = smov 4  }
  0x14   :  { %37 = dma.hbm_to_vmem [thread:$0]  %s1182_s1, 1024, %s32_s16, [#allocation6], %s1069_s27, %s1069_s27, %s1070_s28  }
  0x15   :  { %s971_s7 = scalar_lea.hbm %s1181_s0, 1024 }
  0x16   :  { %p972_p8 = scmp.ne.s32.totalorder %s1181_s0, %s971_s7  ;;  %p975_p9 = scmp.lt.u32.totalorder %s971_s7, %s1181_s0 }
  0x18   :  { %p977_p10 = pnand %p975_p9, %p972_p8 }
  0x1a   :  { %980 = shalt.err (!%p977_p10)
}
  0x1b   :  { %s981_s12 = scalar_lea.vmem %s1099_s18, 1024  ;;  %p986_p12 = scmp.lt.s32.totalorder %s1099_s18, %s1099_s18 }
  0x1c   :  { %p982_p11 = scmp.ne.s32.totalorder %s1099_s18, %s981_s12  ;;  %p987_p13 = scmp.lt.s32.totalorder %s981_s12, %s981_s12 }
  0x1e   :  { %p988_p0 = por %p987_p13, %p986_p12 }
  0x20   :  { %p989_p1 = pnand %p988_p0, %p982_p11 }
  0x22   :  { %992 = shalt.err (!%p989_p1)
}
  0x23   :  { %25 = dma.hbm_to_vmem [thread:$0]  %s1181_s0, 1024, %s1099_s18, [#allocation3], %s1069_s27, %s1069_s27, %s1070_s28  }
  0x24   :  { %s1071_s14 = smov [#allocation7]   ;;  %s993_s19 = scalar_lea.hbm %s1183_s2, 1024 }
  0x25   :  { %s43_s15 = sshll.u32 %s1071_s14, 4  ;;  %p994_p2 = scmp.ne.s32.totalorder %s1183_s2, %s993_s19  ;;  %s44_s15 = int_to_ptr.vmem [resolvable:$true] %s43_s15 }
  0x26   :  { %p997_p3 = scmp.lt.u32.totalorder %s993_s19, %s1183_s2 }
  0x28   :  { %p999_p4 = pnand %p997_p3, %p994_p2 }
  0x2a   :  { %1002 = shalt.err (!%p999_p4)
}
  0x2b   :  { %s1003_s24 = scalar_lea.vmem %s44_s15, 1024  ;;  %p1008_p6 = scmp.lt.s32.totalorder %s44_s15, %s44_s15 }
  0x2c   :  { %p1004_p5 = scmp.ne.s32.totalorder %s44_s15, %s1003_s24  ;;  %p1009_p7 = scmp.lt.s32.totalorder %s1003_s24, %s1003_s24 }
  0x2e   :  { %p1010_p8 = por %p1009_p7, %p1008_p6 }
  0x30   :  { %p1011_p9 = pnand %p1010_p8, %p1004_p5 }
  0x32   :  { %1014 = shalt.err (!%p1011_p9)
}
  0x33   :  { %49 = dma.hbm_to_vmem [thread:$0]  %s1183_s2, 1024, %s44_s15, [#allocation6], %s1069_s27, %s1069_s27, %s1070_s28  }
  0x34   :  { %1059 = dma.done.wait [#allocation3], 1024  }
  0x35   :  { %1060 = vsyncadd [#allocation3], 4294966272 }
  0x36   :  { %1061 = dma.done.wait [#allocation6], 2048  }
  0x37   :  { %1062 = vsyncadd [#allocation6], 4294965248  ;;  %v925_v0 = vld [vmem:[#allocation5] sm:$0xff]   ;;  %v926_v1 = vld [vmem:[#allocation5 + $0x8] sm:$0xff]   ;;  %s1072_s2 = smov [#allocation8]  }
  0x38   :  { %854 = vmatprep.subr.bf16.mxu0 %v925_v0  ;;  %v927_v2 = vld [vmem:[#allocation5 + $0x10] sm:$0xff]   ;;  %v928_v3 = vld [vmem:[#allocation5 + $0x18] sm:$0xff]   ;;  %v933_v4 = vld [vmem:[#allocation2] sm:$0xff]   ;;  %s611_s25 = sshll.u32 %s1072_s2, 4  ;;  %s612_s25 = int_to_ptr.vmem [resolvable:$true] %s611_s25 }
  0x39   :  { %855 = vmatpush3.bf16.msra.mxu0 %v925_v0  ;;  %870 = vmatprep.mubr.bf16.mxu0 %v933_v4  ;;  %v929_v5 = vld [vmem:[#allocation5 + $0x20] sm:$0xff]   ;;  %v930_v6 = vld [vmem:[#allocation5 + $0x28] sm:$0xff]   ;;  %v931_v9 = vld [vmem:[#allocation5 + $0x30] sm:$0xff]   ;;  %s1015_s26 = scalar_lea.vmem %s612_s25, 1024  ;;  %p1020_p11 = scmp.lt.s32.totalorder %s612_s25, %s612_s25 }
  0x3a   :  { %856 = vmatprep.subr.bf16.mxu0 %v926_v1  ;;  %v941_v7 = vld [vmem:[#allocation7] sm:$0xff]   ;;  %v942_v8 = vld [vmem:[#allocation7 + $0x8] sm:$0xff]   ;;  %v943_v10 = vld [vmem:[#allocation7 + $0x10] sm:$0xff]   ;;  %p1016_p10 = scmp.ne.s32.totalorder %s612_s25, %s1015_s26  ;;  %p1021_p12 = scmp.lt.s32.totalorder %s1015_s26, %s1015_s26 }
  0x3b   :  { %886 = vmatprep.subr.bf16.mxu1 %v941_v7  ;;  %v932_v11 = vld [vmem:[#allocation5 + $0x38] sm:$0xff]   ;;  %v945_v13 = vld [vmem:[#allocation7 + $0x20] sm:$0xff]   ;;  %v934_v14 = vld [vmem:[#allocation2 + $0x8] sm:$0xff]  }
  0x3c   :  { %887 = vmatpush3.bf16.msra.mxu1 %v941_v7  ;;  %v944_v12 = vld [vmem:[#allocation7 + $0x18] sm:$0xff]   ;;  %v935_v15 = vld [vmem:[#allocation2 + $0x10] sm:$0xff]   ;;  %v946_v16 = vld [vmem:[#allocation7 + $0x28] sm:$0xff]   ;;  %p1022_p13 = por %p1021_p12, %p1020_p11 }
  0x3d   :  { %857 = vmatpush3.bf16.msra.mxu0 %v926_v1  ;;  %888 = vmatprep.subr.bf16.mxu1 %v942_v8  ;;  %v947_v17 = vld [vmem:[#allocation7 + $0x30] sm:$0xff]   ;;  %v936_v18 = vld [vmem:[#allocation2 + $0x18] sm:$0xff]   ;;  %v937_v19 = vld [vmem:[#allocation2 + $0x20] sm:$0xff]  }
  0x3e   :  { %858 = vmatprep.subr.bf16.mxu0 %v927_v2  ;;  %v938_v20 = vld [vmem:[#allocation2 + $0x28] sm:$0xff]   ;;  %v939_v21 = vld [vmem:[#allocation2 + $0x30] sm:$0xff]   ;;  %v940_v22 = vld [vmem:[#allocation2 + $0x38] sm:$0xff]   ;;  %p1023_p0 = pnand %p1022_p13, %p1016_p10 }
  0x3f   :  { %v948_v23 = vld [vmem:[#allocation7 + $0x38] sm:$0xff]  }
  0x40   :  { %889 = vmatpush3.bf16.msra.mxu1 %v942_v8 }
  0x41   :  { %859 = vmatpush3.bf16.msra.mxu0 %v927_v2  ;;  %890 = vmatprep.subr.bf16.mxu1 %v943_v10 }
  0x42   :  { %860 = vmatprep.subr.bf16.mxu0 %v928_v3 }
  0x44   :  { %891 = vmatpush3.bf16.msra.mxu1 %v943_v10 }
  0x45   :  { %861 = vmatpush3.bf16.msra.mxu0 %v928_v3  ;;  %892 = vmatprep.subr.bf16.mxu1 %v944_v12 }
  0x46   :  { %862 = vmatprep.subr.bf16.mxu0 %v929_v5 }
  0x48   :  { %893 = vmatpush3.bf16.msra.mxu1 %v944_v12 }
  0x49   :  { %863 = vmatpush3.bf16.msra.mxu0 %v929_v5  ;;  %894 = vmatprep.subr.bf16.mxu1 %v945_v13 }
  0x4a   :  { %864 = vmatprep.subr.bf16.mxu0 %v930_v6 }
  0x4c   :  { %895 = vmatpush3.bf16.msra.mxu1 %v945_v13 }
  0x4d   :  { %865 = vmatpush3.bf16.msra.mxu0 %v930_v6  ;;  %896 = vmatprep.subr.bf16.mxu1 %v946_v16 }
  0x4e   :  { %866 = vmatprep.subr.bf16.mxu0 %v931_v9 }
  0x50   :  { %897 = vmatpush3.bf16.msra.mxu1 %v946_v16 }
  0x51   :  { %867 = vmatpush3.bf16.msra.mxu0 %v931_v9  ;;  %898 = vmatprep.subr.bf16.mxu1 %v947_v17 }
  0x52   :  { %868 = vmatprep.subr.bf16.mxu0 %v932_v11 }
  0x54   :  { %899 = vmatpush3.bf16.msra.mxu1 %v947_v17 }
  0x55   :  { %869 = vmatpush3.bf16.msra.mxu0 %v932_v11  ;;  %900 = vmatprep.subr.bf16.mxu1 %v948_v23 }
  0x58   :  { %871 = vmatmul.mubr.bf16.vlgmr.msra.gmra.mrb[0].mxu0 %v934_v14  ;;  %901 = vmatpush3.bf16.msra.mxu1 %v948_v23 }
  0x59   :  { %874 = vmatprep.mubr.bf16.mxu0 %v935_v15 }
  0x60   :  { %875 = vmatmul.mubr.bf16.gmra.mrb[4].mxu0 %v936_v18 }
  0x61   :  { %878 = vmatprep.mubr.bf16.mxu0 %v937_v19 }
  0x68   :  { %879 = vmatmul.mubr.bf16.gmra.mrb[8].mxu0 %v938_v20 }
  0x69   :  { %882 = vmatprep.mubr.bf16.mxu0 %v939_v21 }
  0x70   :  { %883 = vmatmul.mubr.bf16.gmra.mrb[12].mxu0 %v940_v22 }
 0x12b   :  { %v872_v24 = vpop.f32.mrb[0].mxu0 }
 0x12c   :  { %v222_v25 = vpop.f32.mrb[1].mxu0 }
 0x12d   :  { %v873_v26 = vpop.f32.mrb[2].mxu0 }
 0x12e   :  { %v286_v27 = vpack.c.bf16 %v873_v26, %v872_v24  ;;  %v225_v28 = vpop.f32.mrb[3].mxu0 }
 0x12f   :  { %v285_v29 = vpack.c.bf16 %v225_v28, %v222_v25 }
 0x130   :  { %808 = vst [vmem:[#allocation8 + $0x8] sm:$0xff] %v286_v27  }
 0x131   :  { %732 = vst [vmem:[#allocation8] sm:$0xff] %v285_v29   ;;  %902 = vmatprep.mubr.bf16.mxu1 %v285_v29 }
 0x132   :  { %903 = vmatmul.mubr.bf16.vlgmr.msra.gmra.mrb[0].mxu1 %v286_v27 }
 0x133   :  { %v876_v30 = vpop.f32.mrb[4].mxu0 }
 0x134   :  { %v238_v31 = vpop.f32.mrb[5].mxu0 }
 0x135   :  { %v877_v32 = vpop.f32.mrb[6].mxu0 }
 0x136   :  { %v288_v33 = vpack.c.bf16 %v877_v32, %v876_v30  ;;  %v241_v34 = vpop.f32.mrb[7].mxu0 }
 0x137   :  { %v287_v35 = vpack.c.bf16 %v241_v34, %v238_v31 }
 0x138   :  { %810 = vst [vmem:[#allocation8 + $0x18] sm:$0xff] %v288_v33  }
 0x139   :  { %809 = vst [vmem:[#allocation8 + $0x10] sm:$0xff] %v287_v35   ;;  %906 = vmatprep.mubr.bf16.mxu1 %v287_v35 }
 0x13a   :  { %907 = vmatmul.mubr.bf16.gmra.mrb[4].mxu1 %v288_v33 }
 0x13b   :  { %v880_v36 = vpop.f32.mrb[8].mxu0 }
 0x13c   :  { %v254_v37 = vpop.f32.mrb[9].mxu0 }
 0x13d   :  { %v881_v38 = vpop.f32.mrb[10].mxu0 }
 0x13e   :  { %v290_v39 = vpack.c.bf16 %v881_v38, %v880_v36  ;;  %v257_v40 = vpop.f32.mrb[11].mxu0 }
 0x13f   :  { %v289_v41 = vpack.c.bf16 %v257_v40, %v254_v37 }
 0x140   :  { %812 = vst [vmem:[#allocation8 + $0x28] sm:$0xff] %v290_v39  }
 0x141   :  { %811 = vst [vmem:[#allocation8 + $0x20] sm:$0xff] %v289_v41   ;;  %910 = vmatprep.mubr.bf16.mxu1 %v289_v41 }
 0x142   :  { %911 = vmatmul.mubr.bf16.gmra.mrb[8].mxu1 %v290_v39 }
 0x143   :  { %v884_v42 = vpop.f32.mrb[12].mxu0 }
 0x144   :  { %v270_v43 = vpop.f32.mrb[13].mxu0 }
 0x145   :  { %v885_v44 = vpop.f32.mrb[14].mxu0 }
 0x146   :  { %v292_v45 = vpack.c.bf16 %v885_v44, %v884_v42  ;;  %v273_v46 = vpop.f32.mrb[15].mxu0 }
 0x147   :  { %v291_v47 = vpack.c.bf16 %v273_v46, %v270_v43 }
 0x148   :  { %814 = vst [vmem:[#allocation8 + $0x38] sm:$0xff] %v292_v45  }
 0x149   :  { %813 = vst [vmem:[#allocation8 + $0x30] sm:$0xff] %v291_v47   ;;  %914 = vmatprep.mubr.bf16.mxu1 %v291_v47 }
 0x14a   :  { %915 = vmatmul.mubr.bf16.gmra.mrb[12].mxu1 %v292_v45 }
 0x14b   :  { %1026 = shalt.err (!%p1023_p0)
}
 0x14c   :  { %s1027_s5 = scalar_lea.hbm %s1184_s3, 1024 }
 0x14d   :  { %p1028_p1 = scmp.ne.s32.totalorder %s1184_s3, %s1027_s5  ;;  %p1031_p2 = scmp.lt.u32.totalorder %s1027_s5, %s1184_s3 }
 0x14f   :  { %p1033_p3 = pnand %p1031_p2, %p1028_p1 }
 0x151   :  { %1036 = shalt.err (!%p1033_p3)
}
 0x152   :  { %617 = dma.vmem_to_hbm [thread:$0]  %s612_s25, 1024, %s1184_s3, [#allocation4], %s1069_s27, %s1069_s27, %s1070_s28  }
 0x153   :  { %s1073_s3 = smov [#allocation9]  }
 0x154   :  { %s623_s12 = sshll.u32 %s1073_s3, 4  ;;  %s624_s12 = int_to_ptr.vmem [resolvable:$true] %s623_s12 }
 0x155   :  { %s1037_s1 = scalar_lea.vmem %s624_s12, 1024  ;;  %p1042_p5 = scmp.lt.s32.totalorder %s624_s12, %s624_s12 }
 0x156   :  { %p1038_p4 = scmp.ne.s32.totalorder %s624_s12, %s1037_s1  ;;  %p1043_p6 = scmp.lt.s32.totalorder %s1037_s1, %s1037_s1 }
 0x158   :  { %p1044_p7 = por %p1043_p6, %p1042_p5 }
 0x15a   :  { %p1045_p8 = pnand %p1044_p7, %p1038_p4 }
 0x205   :  { %v904_v48 = vpop.f32.mrb[0].mxu1 }
 0x206   :  { %v463_v49 = vpop.f32.mrb[1].mxu1 }
 0x207   :  { %v905_v50 = vpop.f32.mrb[2].mxu1 }
 0x208   :  { %v776_v51 = vpack.c.bf16 %v905_v50, %v904_v48  ;;  %v466_v52 = vpop.f32.mrb[3].mxu1 }
 0x209   :  { %v771_v53 = vpack.c.bf16 %v466_v52, %v463_v49 }
 0x20a   :  { %815 = vst [vmem:[#allocation9 + $0x8] sm:$0xff] %v776_v51  }
 0x20b   :  { %772 = vst [vmem:[#allocation9] sm:$0xff] %v771_v53  }
 0x20d   :  { %v908_v54 = vpop.f32.mrb[4].mxu1 }
 0x20e   :  { %v479_v55 = vpop.f32.mrb[5].mxu1 }
 0x20f   :  { %v909_v56 = vpop.f32.mrb[6].mxu1 }
 0x210   :  { %v786_v57 = vpack.c.bf16 %v909_v56, %v908_v54  ;;  %v482_v58 = vpop.f32.mrb[7].mxu1 }
 0x211   :  { %v781_v59 = vpack.c.bf16 %v482_v58, %v479_v55 }
 0x212   :  { %817 = vst [vmem:[#allocation9 + $0x18] sm:$0xff] %v786_v57  }
 0x213   :  { %816 = vst [vmem:[#allocation9 + $0x10] sm:$0xff] %v781_v59  }
 0x215   :  { %v912_v60 = vpop.f32.mrb[8].mxu1 }
 0x216   :  { %v495_v61 = vpop.f32.mrb[9].mxu1 }
 0x217   :  { %v913_v62 = vpop.f32.mrb[10].mxu1 }
 0x218   :  { %v796_v63 = vpack.c.bf16 %v913_v62, %v912_v60  ;;  %v498_v0 = vpop.f32.mrb[11].mxu1 }
 0x219   :  { %v791_v1 = vpack.c.bf16 %v498_v0, %v495_v61 }
 0x21a   :  { %819 = vst [vmem:[#allocation9 + $0x28] sm:$0xff] %v796_v63  }
 0x21b   :  { %818 = vst [vmem:[#allocation9 + $0x20] sm:$0xff] %v791_v1  }
 0x21d   :  { %v916_v2 = vpop.f32.mrb[12].mxu1 }
 0x21e   :  { %v511_v3 = vpop.f32.mrb[13].mxu1 }
 0x21f   :  { %v917_v4 = vpop.f32.mrb[14].mxu1 }
 0x220   :  { %v806_v5 = vpack.c.bf16 %v917_v4, %v916_v2  ;;  %v514_v6 = vpop.f32.mrb[15].mxu1 }
 0x221   :  { %v801_v7 = vpack.c.bf16 %v514_v6, %v511_v3 }
 0x222   :  { %821 = vst [vmem:[#allocation9 + $0x38] sm:$0xff] %v806_v5  }
 0x223   :  { %820 = vst [vmem:[#allocation9 + $0x30] sm:$0xff] %v801_v7  }
 0x224   :  { %1048 = shalt.err (!%p1045_p8)
}
 0x225   :  { %s1049_s15 = scalar_lea.hbm %s1185_s4, 1024 }
 0x226   :  { %p1050_p9 = scmp.ne.s32.totalorder %s1185_s4, %s1049_s15  ;;  %p1053_p10 = scmp.lt.u32.totalorder %s1049_s15, %s1185_s4 }
 0x228   :  { %p1055_p11 = pnand %p1053_p10, %p1050_p9 }
 0x22a   :  { %1058 = shalt.err (!%p1055_p11)
}
 0x22b   :  { %629 = dma.vmem_to_hbm [thread:$0]  %s624_s12, 1024, %s1185_s4, [#allocation10], %s1069_s27, %s1069_s27, %s1070_s28  }
 0x22c   :  { %1063 = dma.done.wait [#allocation4], 1024  }
 0x22d   :  { %1064 = vsyncadd [#allocation4], 4294966272 }
 0x22e   :  { %1065 = dma.done.wait [#allocation10], 1024  }
 0x22f   :  { %1066 = vsyncadd [#allocation10], 4294966272 }
 0x230   :  { %636 = vsyncpa [#allocation3], 1 }
 0x231   :  { %637 = vsyncpa [#allocation6], 1 }
 0x232   :  { %638 = vsyncpa [#allocation4], 1 }
 0x233   :  { %639 = vsyncpa [#allocation10], 1 }

</bundles_post_ra>
